<compile_context>
chip_gen: v7x
topology: tpu7x:2x2x1
jax: 0.10.0
libtpu: 0.0.40
codegen_flags: <defaults>
</compile_context>

<pallas_src>
import jax
import jax.numpy as jnp
from jax.experimental import pallas as pl
from jax.experimental.pallas import tpu as pltpu

FEAT = 192          # per-sub-model feature width
CAT = 3 * FEAT      # concatenated width (576)
HIDDEN = 32         # fc output width
N_OUT = 2           # fc1 output width
MIN_TILE = 16       # sublane-friendly batch-tile quantum


def _round_up(n, m):
    return (n + m - 1) // m * m


def _head_kernel(x1_ref, x2_ref, x3_ref, w1_ref, w2_ref, w3_ref, b_ref, out_ref):
    """y = [x1 | x2 | x3] @ W_comb + b_comb as three accumulated MXU dots (f32)."""
    acc = jnp.dot(x1_ref[...], w1_ref[...], preferred_element_type=jnp.float32)
    acc += jnp.dot(x2_ref[...], w2_ref[...], preferred_element_type=jnp.float32)
    acc += jnp.dot(x3_ref[...], w3_ref[...], preferred_element_type=jnp.float32)
    out_ref[...] = (acc + b_ref[...]).astype(out_ref.dtype)


def fold_head_params(w_fc, b_fc, w_fc1, b_fc1):
    """Fold fc -> fc1 once (no nonlinearity between them, so mathematically exact).

    w_fc: (576, 32), b_fc: (1, 32), w_fc1: (32, 2), b_fc1: (1, 2)  (all (in, out)).
    Returns three (192, 2) weight slices (one per sub-model) and a (1, 2) bias.
    """
    w_comb = (w_fc @ w_fc1).astype(jnp.float32)            # (576, 2)
    b_comb = (b_fc @ w_fc1 + b_fc1).astype(jnp.float32)    # (1, 2)
    w1 = w_comb[0 * FEAT:1 * FEAT, :]
    w2 = w_comb[1 * FEAT:2 * FEAT, :]
    w3 = w_comb[2 * FEAT:3 * FEAT, :]
    return w1, w2, w3, b_comb


def _choose_tile(B, tile_b):
    """Multiple-of-16 batch tile, capped so big batches give >= 2 grid steps."""
    tile_b = max(MIN_TILE, (tile_b // MIN_TILE) * MIN_TILE)
    tile_b = min(tile_b, _round_up(B, MIN_TILE))
    if B > MIN_TILE:
        # Prefer >= 2 grid steps so "parallel" actually shards across v7x's 2 TCs.
        half = _round_up(-(-B // 2), MIN_TILE)
        tile_b = min(tile_b, half)
    return tile_b


def sum_model1_head(out1, out2, out3, w1, w2, w3, b_comb, *, tile_b=1024):
    """Fused concat -> fc -> fc1 head.

    out1/out2/out3: (B, 192) f32 sub-model outputs.
    w1/w2/w3: (192, 2) folded weight slices, b_comb: (1, 2)  (from fold_head_params).
    Returns (B, 2) f32.
    """
    B = out1.shape[0]
    tile_b = _choose_tile(B, tile_b)
    grid = (pl.cdiv(B, tile_b),)

    # Rough per-call VMEM estimate (double-buffered inputs/output, resident weights).
    vmem_est = (2 * 3 * tile_b * FEAT * 4          # three f32 activation tiles, 2 bufs
                + 2 * tile_b * 128 * 4             # output tile (lane-padded to 128), 2 bufs
                + 3 * FEAT * 128 * 4 + 8 * 128 * 4)  # weights + bias (lane-padded)
    cp_kwargs = dict(dimension_semantics=("parallel",))
    if vmem_est > 12 * 2**20:  # only needed near v5e's 16 MiB scoped default
        cp_kwargs["vmem_limit_bytes"] = int(vmem_est * 2)

    act_spec = pl.BlockSpec((tile_b, FEAT), lambda i: (i, 0))
    w_spec = pl.BlockSpec((FEAT, N_OUT), lambda i: (0, 0))   # VMEM-resident
    b_spec = pl.BlockSpec((1, N_OUT), lambda i: (0, 0))      # VMEM-resident

    out = pl.pallas_call(
        _head_kernel,
        out_shape=jax.ShapeDtypeStruct((B, N_OUT), jnp.float32),
        grid_spec=pltpu.PrefetchScalarGridSpec(
            num_scalar_prefetch=0,
            grid=grid,
            in_specs=[act_spec, act_spec, act_spec, w_spec, w_spec, w_spec, b_spec],
            out_specs=pl.BlockSpec((tile_b, N_OUT), lambda i: (i, 0)),
        ),
        compiler_params=pltpu.CompilerParams(**cp_kwargs),
    )(out1, out2, out3, w1, w2, w3, b_comb)

    return out


def init_params(key):
    """Deterministic PyTorch-style (uniform +/- 1/sqrt(fan_in)) init."""
    k1, k2, k3, k4 = jax.random.split(key, 4)
    lim_fc = 1.0 / (CAT) ** 0.5
    lim_fc1 = 1.0 / HIDDEN ** 0.5
    # PyTorch stores (out, in); transpose to (in, out).
    w_fc_pt = jax.random.uniform(k1, (HIDDEN, CAT), jnp.float32, -lim_fc, lim_fc)
    b_fc = jax.random.uniform(k2, (1, HIDDEN), jnp.float32, -lim_fc, lim_fc)
    w_fc1_pt = jax.random.uniform(k3, (N_OUT, HIDDEN), jnp.float32, -lim_fc1, lim_fc1)
    b_fc1 = jax.random.uniform(k4, (1, N_OUT), jnp.float32, -lim_fc1, lim_fc1)
    return w_fc_pt.T, b_fc, w_fc1_pt.T, b_fc1


def reference(out1, out2, out3, w_fc, b_fc, w_fc1, b_fc1):
    """Unfused f32 reference matching the original module exactly."""
    cat = jnp.concatenate([out1, out2, out3], axis=1)
    h = cat @ w_fc + b_fc          # fc
    return h @ w_fc1 + b_fc1       # fc1


if __name__ == "__main__":
    B = 8  # small demo batch
    key = jax.random.PRNGKey(0)
    kp, k1, k2, k3 = jax.random.split(key, 4)

    # Stand-ins for the three sub-model outputs (each (B, 192)).
    out1 = jax.random.normal(k1, (B, FEAT), jnp.float32)
    out2 = jax.random.normal(k2, (B, FEAT), jnp.float32)
    out3 = jax.random.normal(k3, (B, FEAT), jnp.float32)

    w_fc, b_fc, w_fc1, b_fc1 = init_params(kp)

    # Fold fc -> fc1 once, outside the per-call path.
    w1, w2, w3, b_comb = fold_head_params(w_fc, b_fc, w_fc1, b_fc1)

    y = sum_model1_head(out1, out2, out3, w1, w2, w3, b_comb)
    y = jax.block_until_ready(y)

    y_ref = reference(out1, out2, out3, w_fc, b_fc, w_fc1, b_fc1)
    assert y.shape == (B, N_OUT)
    # All-f32 path; only rounding-order differences from the host-side fc/fc1 fold.
    assert jnp.allclose(y, y_ref, atol=1e-4, rtol=1e-4), "mismatch vs reference"

    print("KERNEL_OK")
</pallas_src>

<mosaic_0001>
module attributes {stable_mosaic.version = 11 : i64} {
  func.func @_head_kernel(%arg0: i32, %arg1: memref<16x192xf32, #tpu.memory_space<vmem>>, %arg2: memref<16x192xf32, #tpu.memory_space<vmem>>, %arg3: memref<16x192xf32, #tpu.memory_space<vmem>>, %arg4: memref<192x2xf32, #tpu.memory_space<vmem>>, %arg5: memref<192x2xf32, #tpu.memory_space<vmem>>, %arg6: memref<192x2xf32, #tpu.memory_space<vmem>>, %arg7: memref<1x2xf32, #tpu.memory_space<vmem>>, %arg8: memref<16x2xf32, #tpu.memory_space<vmem>>) attributes {dimension_semantics = [#tpu.dimension_semantics<parallel>], iteration_bounds = array<i64: 1>, scalar_prefetch = 0 : i64, scratch_operands = 0 : i64, tpu.core_type = #tpu.core_type<tc>, window_params = [{transform_indices = @transform_0, window_bounds = array<i64: 16, 192>}, {transform_indices = @transform_1, window_bounds = array<i64: 16, 192>}, {transform_indices = @transform_2, window_bounds = array<i64: 16, 192>}, {pipeline_mode = #tpu.pipeline_mode<synchronous>, transform_indices = @transform_3, window_bounds = array<i64: 192, 2>}, {pipeline_mode = #tpu.pipeline_mode<synchronous>, transform_indices = @transform_4, window_bounds = array<i64: 192, 2>}, {pipeline_mode = #tpu.pipeline_mode<synchronous>, transform_indices = @transform_5, window_bounds = array<i64: 192, 2>}, {pipeline_mode = #tpu.pipeline_mode<synchronous>, transform_indices = @transform_6, window_bounds = array<i64: 1, 2>}, {transform_indices = @transform_7, window_bounds = array<i64: 16, 2>}]} {
    %c0 = arith.constant 0 : index
    %c0_0 = arith.constant 0 : index
    %0 = vector.load %arg1[%c0, %c0_0] : memref<16x192xf32, #tpu.memory_space<vmem>>, vector<16x192xf32>
    %c0_1 = arith.constant 0 : index
    %c0_2 = arith.constant 0 : index
    %1 = vector.load %arg4[%c0_1, %c0_2] : memref<192x2xf32, #tpu.memory_space<vmem>>, vector<192x2xf32>
    %cst = arith.constant dense<0.000000e+00> : vector<16x2xf32>
    %2 = tpu.matmul %0, %1, %cst {dimension_numbers = #tpu.dot_dimension_numbers<[1], [0], [0], [1], [0, 0, 1, 1], [], []>} : vector<16x192xf32>, vector<192x2xf32>, vector<16x2xf32> -> vector<16x2xf32>
    %c0_3 = arith.constant 0 : index
    %c0_4 = arith.constant 0 : index
    %3 = vector.load %arg2[%c0_3, %c0_4] : memref<16x192xf32, #tpu.memory_space<vmem>>, vector<16x192xf32>
    %c0_5 = arith.constant 0 : index
    %c0_6 = arith.constant 0 : index
    %4 = vector.load %arg5[%c0_5, %c0_6] : memref<192x2xf32, #tpu.memory_space<vmem>>, vector<192x2xf32>
    %cst_7 = arith.constant dense<0.000000e+00> : vector<16x2xf32>
    %5 = tpu.matmul %3, %4, %cst_7 {dimension_numbers = #tpu.dot_dimension_numbers<[1], [0], [0], [1], [0, 0, 1, 1], [], []>} : vector<16x192xf32>, vector<192x2xf32>, vector<16x2xf32> -> vector<16x2xf32>
    %6 = arith.addf %2, %5 : vector<16x2xf32>
    %c0_8 = arith.constant 0 : index
    %c0_9 = arith.constant 0 : index
    %7 = vector.load %arg3[%c0_8, %c0_9] : memref<16x192xf32, #tpu.memory_space<vmem>>, vector<16x192xf32>
    %c0_10 = arith.constant 0 : index
    %c0_11 = arith.constant 0 : index
    %8 = vector.load %arg6[%c0_10, %c0_11] : memref<192x2xf32, #tpu.memory_space<vmem>>, vector<192x2xf32>
    %cst_12 = arith.constant dense<0.000000e+00> : vector<16x2xf32>
    %9 = tpu.matmul %7, %8, %cst_12 {dimension_numbers = #tpu.dot_dimension_numbers<[1], [0], [0], [1], [0, 0, 1, 1], [], []>} : vector<16x192xf32>, vector<192x2xf32>, vector<16x2xf32> -> vector<16x2xf32>
    %10 = arith.addf %6, %9 : vector<16x2xf32>
    %c0_13 = arith.constant 0 : index
    %c0_14 = arith.constant 0 : index
    %11 = vector.load %arg7[%c0_13, %c0_14] : memref<1x2xf32, #tpu.memory_space<vmem>>, vector<1x2xf32>
    %12 = vector.broadcast %11 : vector<1x2xf32> to vector<16x2xf32>
    %13 = arith.addf %10, %12 : vector<16x2xf32>
    %c0_15 = arith.constant 0 : index
    %c0_16 = arith.constant 0 : index
    %14 = vector.load %arg8[%c0_15, %c0_16] : memref<16x2xf32, #tpu.memory_space<vmem>>, vector<16x2xf32>
    tpu.vector_store %arg8[%c0_15, %c0_16], %13 {strides = array<i32>} : memref<16x2xf32, #tpu.memory_space<vmem>>, vector<16x2xf32>,
    return
  }
  func.func @transform_0(%arg0: i32) -> (i32, i32) {
    %c0_i32 = arith.constant 0 : i32
    %c0_i32_0 = arith.constant 0 : i32
    return %arg0, %c0_i32 : i32, i32
  }
  func.func @transform_1(%arg0: i32) -> (i32, i32) {
    %c0_i32 = arith.constant 0 : i32
    %c0_i32_0 = arith.constant 0 : i32
    return %arg0, %c0_i32 : i32, i32
  }
  func.func @transform_2(%arg0: i32) -> (i32, i32) {
    %c0_i32 = arith.constant 0 : i32
    %c0_i32_0 = arith.constant 0 : i32
    return %arg0, %c0_i32 : i32, i32
  }
  func.func @transform_3(%arg0: i32) -> (i32, i32) {
    %c0_i32 = arith.constant 0 : i32
    %c0_i32_0 = arith.constant 0 : i32
    %c0_i32_1 = arith.constant 0 : i32
    return %c0_i32, %c0_i32_0 : i32, i32
  }
  func.func @transform_4(%arg0: i32) -> (i32, i32) {
    %c0_i32 = arith.constant 0 : i32
    %c0_i32_0 = arith.constant 0 : i32
    %c0_i32_1 = arith.constant 0 : i32
    return %c0_i32, %c0_i32_0 : i32, i32
  }
  func.func @transform_5(%arg0: i32) -> (i32, i32) {
    %c0_i32 = arith.constant 0 : i32
    %c0_i32_0 = arith.constant 0 : i32
    %c0_i32_1 = arith.constant 0 : i32
    return %c0_i32, %c0_i32_0 : i32, i32
  }
  func.func @transform_6(%arg0: i32) -> (i32, i32) {
    %c0_i32 = arith.constant 0 : i32
    %c0_i32_0 = arith.constant 0 : i32
    %c0_i32_1 = arith.constant 0 : i32
    return %c0_i32, %c0_i32_0 : i32, i32
  }
  func.func @transform_7(%arg0: i32) -> (i32, i32) {
    %c0_i32 = arith.constant 0 : i32
    %c0_i32_0 = arith.constant 0 : i32
    return %arg0, %c0_i32 : i32, i32
  }
}

</mosaic_0001>

<bundles_post_ra>
// kernel: tpu_custom_call.1
= control target key start
LH: loop header
LB: loop body
LE: loop exit
PB: predicated region body
PF: predicated region fallthrough
CT: control target
= control target key end

     0   :  { %v548_v3 = vmov 0.0|0.0   ;;  %vm82_vm0 = vcmask 523264   ;;  %vm365_vm1 = vcmask 15360   ;;  %s901_s0 = inlined_call_operand.vmem [shape: f32[8,192], index: 0, kind: input, shape index: {}]   ;;  %s902_s1 = inlined_call_operand.vmem [shape: f32[8,192], index: 1, kind: input, shape index: {}]   ;;  %s903_s2 = inlined_call_operand.vmem [shape: f32[8,192], index: 2, kind: input, shape index: {}]   ;;  %s904_s3 = inlined_call_operand.vmem [shape: f32[192,2], index: 3, kind: input, shape index: {}]   ;;  %s905_s4 = inlined_call_operand.vmem [shape: f32[192,2], index: 4, kind: input, shape index: {}]   ;;  %s906_s5 = inlined_call_operand.vmem [shape: f32[192,2], index: 5, kind: input, shape index: {}]   ;;  %s907_s6 = inlined_call_operand.vmem [shape: f32[1,2], index: 6, kind: input, shape index: {}]   ;;  %s908_s7 = inlined_call_operand.vmem [shape: f32[8,2], index: 7, kind: output, shape index: {}]  }
   0x1   :  { %v58_v0 = vld [vmem:[%s905_s4] sm:$0xff]  ;;  %v59_v1 = vld [vmem:[%s905_s4 + $0x8] sm:$0xff]  ;;  %415 = vmatprep.subr.bf16.mxu0 %v548_v3  ;;  %451 = vmatprep.subr.bf16.mxu1 %v548_v3  ;;  %v60_v6 = vld [vmem:[%s905_s4 + $0x10] sm:$0xff] }
   0x2   :  { %v30_v2 = vld [vmem:[%s904_s3] sm:$0xff]  ;;  %v416_v4 = vpack.c.bf16 %v59_v1, %v58_v0  ;;  %v31_v5 = vld [vmem:[%s904_s3 + $0x8] sm:$0xff]  ;;  %v61_v7 = vld [vmem:[%s905_s4 + $0x18] sm:$0xff] }
   0x3   :  { %v452_v8 = vpack.c.bf16 %v31_v5, %v30_v2  ;;  %v32_v9 = vld [vmem:[%s904_s3 + $0x10] sm:$0xff]  ;;  %v33_v10 = vld [vmem:[%s904_s3 + $0x18] sm:$0xff]  ;;  %v419_v11 = vpack.c.bf16 %v61_v7, %v60_v6  ;;  %v62_v13 = vld [vmem:[%s905_s4 + $0x20] sm:$0xff] }
   0x4   :  { %417 = vmatpush1.bf16.msra.mxu0 %v416_v4  ;;  %v455_v12 = vpack.c.bf16 %v33_v10, %v32_v9  ;;  %v63_v14 = vld [vmem:[%s905_s4 + $0x28] sm:$0xff]  ;;  %v34_v15 = vld [vmem:[%s904_s3 + $0x20] sm:$0xff]  ;;  %v64_v19 = vld [vmem:[%s905_s4 + $0x30] sm:$0xff] }
   0x5   :  { %453 = vmatpush1.bf16.msra.mxu1 %v452_v8  ;;  %418 = vmatprep.subr.bf16.mxu0 %v548_v3  ;;  %v35_v16 = vld [vmem:[%s904_s3 + $0x28] sm:$0xff]  ;;  %v422_v17 = vpack.c.bf16 %v63_v14, %v62_v13  ;;  %v65_v20 = vld [vmem:[%s905_s4 + $0x38] sm:$0xff]  ;;  %v36_v21 = vld [vmem:[%s904_s3 + $0x30] sm:$0xff] }
   0x6   :  { %454 = vmatprep.subr.bf16.mxu1 %v548_v3  ;;  %v458_v18 = vpack.c.bf16 %v35_v16, %v34_v15  ;;  %v37_v22 = vld [vmem:[%s904_s3 + $0x38] sm:$0xff]  ;;  %v425_v23 = vpack.c.bf16 %v65_v20, %v64_v19  ;;  %v66_v25 = vld [vmem:[%s905_s4 + $0x40] sm:$0xff]  ;;  %v67_v26 = vld [vmem:[%s905_s4 + $0x48] sm:$0xff] }
   0x7   :  { %v461_v24 = vpack.c.bf16 %v37_v22, %v36_v21  ;;  %v38_v27 = vld [vmem:[%s904_s3 + $0x40] sm:$0xff]  ;;  %v39_v28 = vld [vmem:[%s904_s3 + $0x48] sm:$0xff]  ;;  %v428_v29 = vpack.c.bf16 %v67_v26, %v66_v25  ;;  %v68_v30 = vld [vmem:[%s905_s4 + $0x50] sm:$0xff] }
   0x8   :  { %420 = vmatpush1.bf16.msra.mxu0 %v419_v11  ;;  %v464_v31 = vpack.c.bf16 %v39_v28, %v38_v27  ;;  %v69_v32 = vld [vmem:[%s905_s4 + $0x58] sm:$0xff]  ;;  %v55_v33 = vld [vmem:[%s902_s1 + $0x8] sm:$0xff]  ;;  %v40_v35 = vld [vmem:[%s904_s3 + $0x50] sm:$0xff] }
   0x9   :  { %456 = vmatpush1.bf16.msra.mxu1 %v455_v12  ;;  %421 = vmatprep.subr.bf16.mxu0 %v548_v3  ;;  %v27_v34 = vld [vmem:[%s901_s0 + $0x8] sm:$0xff]  ;;  %v41_v36 = vld [vmem:[%s904_s3 + $0x58] sm:$0xff]  ;;  %v431_v37 = vpack.c.bf16 %v69_v32, %v68_v30  ;;  %v70_v39 = vld [vmem:[%s905_s4 + $0x60] sm:$0xff] }
   0xa   :  { %457 = vmatprep.subr.bf16.mxu1 %v548_v3  ;;  %408 = vmatprep.mubr.msk.f32.mxu0 %vm82_vm0, %v55_v33  ;;  %v467_v38 = vpack.c.bf16 %v41_v36, %v40_v35  ;;  %v71_v40 = vld [vmem:[%s905_s4 + $0x68] sm:$0xff]  ;;  %v42_v41 = vld [vmem:[%s904_s3 + $0x60] sm:$0xff]  ;;  %v72_v45 = vld [vmem:[%s905_s4 + $0x70] sm:$0xff] }
   0xb   :  { %410 = vmatprep.mubr.msk.f32.mxu1 %vm82_vm0, %v27_v34  ;;  %v43_v42 = vld [vmem:[%s904_s3 + $0x68] sm:$0xff]  ;;  %v434_v43 = vpack.c.bf16 %v71_v40, %v70_v39  ;;  %v73_v46 = vld [vmem:[%s905_s4 + $0x78] sm:$0xff]  ;;  %v44_v47 = vld [vmem:[%s904_s3 + $0x70] sm:$0xff] }
   0xc   :  { %423 = vmatpush1.bf16.msra.mxu0 %v422_v17  ;;  %v470_v44 = vpack.c.bf16 %v43_v42, %v42_v41  ;;  %v45_v48 = vld [vmem:[%s904_s3 + $0x78] sm:$0xff]  ;;  %v437_v49 = vpack.c.bf16 %v73_v46, %v72_v45  ;;  %v74_v51 = vld [vmem:[%s905_s4 + $0x80] sm:$0xff]  ;;  %v75_v52 = vld [vmem:[%s905_s4 + $0x88] sm:$0xff] }
   0xd   :  { %459 = vmatpush1.bf16.msra.mxu1 %v458_v18  ;;  %424 = vmatprep.subr.bf16.mxu0 %v548_v3  ;;  %v473_v50 = vpack.c.bf16 %v45_v48, %v44_v47  ;;  %v46_v53 = vld [vmem:[%s904_s3 + $0x80] sm:$0xff]  ;;  %v47_v54 = vld [vmem:[%s904_s3 + $0x88] sm:$0xff]  ;;  %v440_v55 = vpack.c.bf16 %v75_v52, %v74_v51  ;;  %v76_v57 = vld [vmem:[%s905_s4 + $0x90] sm:$0xff] }
   0xe   :  { %460 = vmatprep.subr.bf16.mxu1 %v548_v3  ;;  %v476_v56 = vpack.c.bf16 %v47_v54, %v46_v53  ;;  %v77_v58 = vld [vmem:[%s905_s4 + $0x98] sm:$0xff]  ;;  %v48_v59 = vld [vmem:[%s904_s3 + $0x90] sm:$0xff]  ;;  %v78_v63 = vld [vmem:[%s905_s4 + $0xa0] sm:$0xff] }
   0xf   :  { %v49_v60 = vld [vmem:[%s904_s3 + $0x98] sm:$0xff]  ;;  %v443_v61 = vpack.c.bf16 %v77_v58, %v76_v57  ;;  %v79_v0 = vld [vmem:[%s905_s4 + $0xa8] sm:$0xff]  ;;  %v50_v1 = vld [vmem:[%s904_s3 + $0xa0] sm:$0xff] }
  0x10   :  { %426 = vmatpush1.bf16.msra.mxu0 %v425_v23  ;;  %v479_v62 = vpack.c.bf16 %v49_v60, %v48_v59  ;;  %v51_v2 = vld [vmem:[%s904_s3 + $0xa8] sm:$0xff]  ;;  %v446_v4 = vpack.c.bf16 %v79_v0, %v78_v63  ;;  %v80_v6 = vld [vmem:[%s905_s4 + $0xb0] sm:$0xff]  ;;  %v81_v7 = vld [vmem:[%s905_s4 + $0xb8] sm:$0xff] }
  0x11   :  { %462 = vmatpush1.bf16.msra.mxu1 %v461_v24  ;;  %427 = vmatprep.subr.bf16.mxu0 %v548_v3  ;;  %v482_v5 = vpack.c.bf16 %v51_v2, %v50_v1  ;;  %v52_v8 = vld [vmem:[%s904_s3 + $0xb0] sm:$0xff]  ;;  %v53_v9 = vld [vmem:[%s904_s3 + $0xb8] sm:$0xff]  ;;  %v449_v10 = vpack.c.bf16 %v81_v7, %v80_v6  ;;  %v249_v12 = vld [vmem:[%s906_s5] sm:$0xff] }
  0x12   :  { %463 = vmatprep.subr.bf16.mxu1 %v548_v3  ;;  %v485_v11 = vpack.c.bf16 %v53_v9, %v52_v8  ;;  %v250_v13 = vld [vmem:[%s906_s5 + $0x8] sm:$0xff]  ;;  %v54_v14 = vld [vmem:[%s902_s1] sm:$0xff]  ;;  %v251_v17 = vld [vmem:[%s906_s5 + $0x10] sm:$0xff] }
  0x13   :  { %v488_v15 = vpack.c.bf16 %v250_v13, %v249_v12  ;;  %v26_v16 = vld [vmem:[%s901_s0] sm:$0xff]  ;;  %v252_v18 = vld [vmem:[%s906_s5 + $0x18] sm:$0xff]  ;;  %v56_v21 = vld [vmem:[%s902_s1 + $0x10] sm:$0xff] }
  0x14   :  { %429 = vmatpush1.bf16.msra.mxu0 %v428_v29  ;;  %v57_v19 = vld [vmem:[%s902_s1 + $0x18] sm:$0xff]  ;;  %v491_v20 = vpack.c.bf16 %v252_v18, %v251_v17  ;;  %v253_v23 = vld [vmem:[%s906_s5 + $0x20] sm:$0xff]  ;;  %v254_v24 = vld [vmem:[%s906_s5 + $0x28] sm:$0xff] }
  0x15   :  { %465 = vmatpush1.bf16.msra.mxu1 %v464_v31  ;;  %430 = vmatprep.subr.bf16.mxu0 %v548_v3  ;;  %v29_v22 = vld [vmem:[%s901_s0 + $0x18] sm:$0xff]  ;;  %v28_v25 = vld [vmem:[%s901_s0 + $0x10] sm:$0xff]  ;;  %v246_v26 = vld [vmem:[%s903_s2 + $0x8] sm:$0xff]  ;;  %v494_v27 = vpack.c.bf16 %v254_v24, %v253_v23 }
  0x16   :  { %466 = vmatprep.subr.bf16.mxu1 %v548_v3  ;;  %v248_v28 = vld [vmem:[%s903_s2 + $0x18] sm:$0xff]  ;;  %v255_v29 = vld [vmem:[%s906_s5 + $0x30] sm:$0xff]  ;;  %v257_v32 = vld [vmem:[%s906_s5 + $0x40] sm:$0xff] }
  0x17   :  { %v256_v30 = vld [vmem:[%s906_s5 + $0x38] sm:$0xff]  ;;  %v258_v33 = vld [vmem:[%s906_s5 + $0x48] sm:$0xff]  ;;  %v259_v35 = vld [vmem:[%s906_s5 + $0x50] sm:$0xff] }
  0x18   :  { %432 = vmatpush1.bf16.msra.mxu0 %v431_v37  ;;  %v497_v31 = vpack.c.bf16 %v256_v30, %v255_v29  ;;  %v500_v34 = vpack.c.bf16 %v258_v33, %v257_v32  ;;  %v260_v36 = vld [vmem:[%s906_s5 + $0x58] sm:$0xff]  ;;  %v262_v39 = vld [vmem:[%s906_s5 + $0x68] sm:$0xff]  ;;  %v263_v41 = vld [vmem:[%s906_s5 + $0x70] sm:$0xff] }
  0x19   :  { %468 = vmatpush1.bf16.msra.mxu1 %v467_v38  ;;  %433 = vmatprep.subr.bf16.mxu0 %v548_v3  ;;  %v503_v37 = vpack.c.bf16 %v260_v36, %v259_v35  ;;  %v261_v38 = vld [vmem:[%s906_s5 + $0x60] sm:$0xff]  ;;  %v264_v42 = vld [vmem:[%s906_s5 + $0x78] sm:$0xff]  ;;  %v266_v45 = vld [vmem:[%s906_s5 + $0x88] sm:$0xff] }
  0x1a   :  { %469 = vmatprep.subr.bf16.mxu1 %v548_v3  ;;  %v506_v40 = vpack.c.bf16 %v262_v39, %v261_v38  ;;  %v267_v47 = vld [vmem:[%s906_s5 + $0x90] sm:$0xff]  ;;  %v268_v48 = vld [vmem:[%s906_s5 + $0x98] sm:$0xff]  ;;  %v270_v51 = vld [vmem:[%s906_s5 + $0xa8] sm:$0xff] }
  0x1b   :  { %v271_v53 = vld [vmem:[%s906_s5 + $0xb0] sm:$0xff]  ;;  %v272_v54 = vld [vmem:[%s906_s5 + $0xb8] sm:$0xff] }
  0x1c   :  { %435 = vmatpush1.bf16.msra.mxu0 %v434_v43  ;;  %v509_v43 = vpack.c.bf16 %v264_v42, %v263_v41  ;;  %v247_v57 = vld [vmem:[%s903_s2 + $0x10] sm:$0xff] }
  0x1d   :  { %471 = vmatpush1.bf16.msra.mxu1 %v470_v44  ;;  %436 = vmatprep.subr.bf16.mxu0 %v548_v3  ;;  %v265_v44 = vld [vmem:[%s906_s5 + $0x80] sm:$0xff] }
  0x1e   :  { %472 = vmatprep.subr.bf16.mxu1 %v548_v3  ;;  %v512_v46 = vpack.c.bf16 %v266_v45, %v265_v44 }
  0x20   :  { %438 = vmatpush1.bf16.msra.mxu0 %v437_v49  ;;  %v515_v49 = vpack.c.bf16 %v268_v48, %v267_v47 }
  0x21   :  { %474 = vmatpush1.bf16.msra.mxu1 %v473_v50  ;;  %439 = vmatprep.subr.bf16.mxu0 %v548_v3  ;;  %v269_v50 = vld [vmem:[%s906_s5 + $0xa0] sm:$0xff] }
  0x22   :  { %475 = vmatprep.subr.bf16.mxu1 %v548_v3  ;;  %v518_v52 = vpack.c.bf16 %v270_v51, %v269_v50 }
  0x24   :  { %441 = vmatpush1.bf16.msra.mxu0 %v440_v55  ;;  %v521_v55 = vpack.c.bf16 %v272_v54, %v271_v53 }
  0x25   :  { %477 = vmatpush1.bf16.msra.mxu1 %v476_v56  ;;  %442 = vmatprep.subr.bf16.mxu0 %v548_v3  ;;  %v245_v56 = vld [vmem:[%s903_s2] sm:$0xff] }
  0x26   :  { %478 = vmatprep.subr.bf16.mxu1 %v548_v3 }
  0x28   :  { %444 = vmatpush1.bf16.msra.mxu0 %v443_v61 }
  0x29   :  { %480 = vmatpush1.bf16.msra.mxu1 %v479_v62  ;;  %445 = vmatprep.subr.bf16.mxu0 %v548_v3 }
  0x2a   :  { %481 = vmatprep.subr.bf16.mxu1 %v548_v3 }
  0x2c   :  { %447 = vmatpush1.bf16.msra.mxu0 %v446_v4  ;;  %v414_v4 = vld [vmem:[%s907_s6] ss:$0 sm:$0xff] }
  0x2d   :  { %483 = vmatpush1.bf16.msra.mxu1 %v482_v5  ;;  %448 = vmatprep.subr.bf16.mxu0 %v548_v3 }
  0x2e   :  { %484 = vmatprep.subr.bf16.mxu1 %v548_v3 }
  0x30   :  { %450 = vmatpush1.bf16.msra.mxu0 %v449_v10 }
  0x31   :  { %486 = vmatpush1.bf16.msra.mxu1 %v485_v11  ;;  %487 = vmatprep.subr.bf16.mxu0 %v548_v3 }
  0x32   :  { %523 = vmatprep.subr.bf16.mxu1 %v548_v3 }
  0x33   :  { %154 = vmatmul.mubr.f32.vlgmr.msra.gmra.mrb[0].mxu0 %v54_v14 }
  0x34   :  { %235 = vmatmul.mubr.f32.vlgmr.msra.gmra.mrb[0].mxu1 %v26_v16  ;;  %489 = vmatpush1.bf16.msra.mxu0 %v488_v15 }
  0x35   :  { %535 = vmatpush1.bf16.msra.mxu1 %v488_v15  ;;  %490 = vmatprep.subr.bf16.mxu0 %v548_v3 }
  0x36   :  { %524 = vmatprep.subr.bf16.mxu1 %v548_v3  ;;  %409 = vmatprep.mubr.msk.f32.mxu0 %vm82_vm0, %v57_v19 }
  0x37   :  { %159 = vmatmul.mubr.f32.gmra.mrb[2].mxu0 %v56_v21  ;;  %411 = vmatprep.mubr.msk.f32.mxu1 %vm82_vm0, %v29_v22 }
  0x38   :  { %492 = vmatpush1.bf16.msra.mxu0 %v491_v20  ;;  %240 = vmatmul.mubr.f32.gmra.mrb[2].mxu1 %v28_v25 }
  0x39   :  { %536 = vmatpush1.bf16.msra.mxu1 %v491_v20  ;;  %493 = vmatprep.subr.bf16.mxu0 %v548_v3 }
  0x3a   :  { %525 = vmatprep.subr.bf16.mxu1 %v548_v3  ;;  %412 = vmatprep.mubr.msk.f32.mxu0 %vm82_vm0, %v246_v26 }
  0x3b   :  { %413 = vmatprep.mubr.msk.f32.mxu1 %vm82_vm0, %v248_v28 }
  0x3c   :  { %495 = vmatpush1.bf16.msra.mxu0 %v494_v27 }
  0x3d   :  { %537 = vmatpush1.bf16.msra.mxu1 %v494_v27  ;;  %496 = vmatprep.subr.bf16.mxu0 %v548_v3 }
  0x3e   :  { %526 = vmatprep.subr.bf16.mxu1 %v548_v3 }
  0x40   :  { %498 = vmatpush1.bf16.msra.mxu0 %v497_v31 }
  0x41   :  { %538 = vmatpush1.bf16.msra.mxu1 %v497_v31  ;;  %499 = vmatprep.subr.bf16.mxu0 %v548_v3 }
  0x42   :  { %527 = vmatprep.subr.bf16.mxu1 %v548_v3 }
  0x44   :  { %501 = vmatpush1.bf16.msra.mxu0 %v500_v34 }
  0x45   :  { %539 = vmatpush1.bf16.msra.mxu1 %v500_v34  ;;  %502 = vmatprep.subr.bf16.mxu0 %v548_v3 }
  0x46   :  { %528 = vmatprep.subr.bf16.mxu1 %v548_v3 }
  0x48   :  { %504 = vmatpush1.bf16.msra.mxu0 %v503_v37 }
  0x49   :  { %540 = vmatpush1.bf16.msra.mxu1 %v503_v37  ;;  %505 = vmatprep.subr.bf16.mxu0 %v548_v3 }
  0x4a   :  { %529 = vmatprep.subr.bf16.mxu1 %v548_v3 }
  0x4c   :  { %507 = vmatpush1.bf16.msra.mxu0 %v506_v40 }
  0x4d   :  { %541 = vmatpush1.bf16.msra.mxu1 %v506_v40  ;;  %508 = vmatprep.subr.bf16.mxu0 %v548_v3 }
  0x4e   :  { %530 = vmatprep.subr.bf16.mxu1 %v548_v3 }
  0x50   :  { %510 = vmatpush1.bf16.msra.mxu0 %v509_v43 }
  0x51   :  { %542 = vmatpush1.bf16.msra.mxu1 %v509_v43  ;;  %511 = vmatprep.subr.bf16.mxu0 %v548_v3 }
  0x52   :  { %531 = vmatprep.subr.bf16.mxu1 %v548_v3 }
  0x54   :  { %513 = vmatpush1.bf16.msra.mxu0 %v512_v46 }
  0x55   :  { %543 = vmatpush1.bf16.msra.mxu1 %v512_v46  ;;  %514 = vmatprep.subr.bf16.mxu0 %v548_v3 }
  0x56   :  { %532 = vmatprep.subr.bf16.mxu1 %v548_v3 }
  0x58   :  { %516 = vmatpush1.bf16.msra.mxu0 %v515_v49 }
  0x59   :  { %544 = vmatpush1.bf16.msra.mxu1 %v515_v49  ;;  %517 = vmatprep.subr.bf16.mxu0 %v548_v3 }
  0x5a   :  { %533 = vmatprep.subr.bf16.mxu1 %v548_v3 }
  0x5c   :  { %519 = vmatpush1.bf16.msra.mxu0 %v518_v52 }
  0x5d   :  { %545 = vmatpush1.bf16.msra.mxu1 %v518_v52  ;;  %520 = vmatprep.subr.bf16.mxu0 %v548_v3 }
  0x5e   :  { %534 = vmatprep.subr.bf16.mxu1 %v548_v3 }
  0x60   :  { %522 = vmatpush1.bf16.msra.mxu0 %v521_v55 }
  0x61   :  { %546 = vmatpush1.bf16.msra.mxu1 %v521_v55 }
  0x63   :  { %344 = vmatmul.mubr.f32.vlgmr.msra.gmra.mrb[4].mxu0 %v245_v56 }
  0x64   :  { %349 = vmatmul.mubr.f32.vlgmr.msra.gmra.mrb[4].mxu1 %v247_v57 }
 0x106   :  { %v155_v58 = vpop.f32.mrb[0].mxu0 }
 0x107   :  { %v157_v59 = vpop.f32.mrb[1].mxu0  ;;  %v236_v60 = vpop.f32.mrb[0].mxu1 }
 0x108   :  { %v237_v61 = vadd.f32 %v236_v60, %v155_v58  ;;  %v238_v62 = vpop.f32.mrb[1].mxu1 }
 0x10a   :  { %v160_v63 = vpop.f32.mrb[2].mxu0 }
 0x10b   :  { %v162_v0 = vpop.f32.mrb[3].mxu0  ;;  %v241_v3 = vpop.f32.mrb[2].mxu1 }
 0x10c   :  { %v243_v1 = vpop.f32.mrb[3].mxu1 }
 0x136   :  { %v345_v2 = vpop.f32.mrb[4].mxu0 }
 0x137   :  { %v354_v5 = vadd.f32 %v345_v2, %v237_v61  ;;  %v350_v6 = vpop.f32.mrb[4].mxu1  ;;  %v347_v7 = vpop.f32.mrb[5].mxu0 }
 0x138   :  { %v352_v8 = vpop.f32.mrb[5].mxu1 }
 0x139   :  { %v363_v9 = vadd.f32 %v414_v4, %v354_v5 }
 0x13b   :  { %366 = vst.msk [vmem:[#allocation2] sm:$0xff] %vm365_vm1, %v363_v9 }
 0x142   :  { %v397_v10 = vld [vmem:[#allocation2] sm:$0xff] }
 0x143   :  { %398 = vst [vmem:[%s908_s7] sm:$0xff] %v397_v10 }

</bundles_post_ra>
